<compile_context>
chip_gen: v5e
topology: v5e:2x2
jax: 0.10.0
libtpu: 0.0.40
codegen_flags: <defaults>
</compile_context>

<pallas_src>
import functools

import jax
import jax.numpy as jnp
from jax.experimental import pallas as pl
from jax.experimental.pallas import tpu as pltpu

INPUT_SIZE = 70
HIDDEN_1 = 64
HIDDEN_2 = 32
OUTPUT_SIZE = 6


def _round_up(n, m):
    return ((n + m - 1) // m) * m


def mario_mlp_kernel(x_ref, w1_ref, b1_ref, w2_ref, b2_ref, w3_ref, b3_ref,
                     o_ref, *, approx_sigmoid=False):
    x = x_ref[...]                                                       # (TB, 70)

    # fc1 + ReLU  (accumulate in f32, elementwise in f32)
    h1 = jnp.dot(x, w1_ref[...], preferred_element_type=jnp.float32)    # (TB, 64) f32
    h1 = jnp.maximum(h1 + b1_ref[...], 0.0)
    h1 = h1.astype(w2_ref.dtype)                                         # bf16 cast only on bf16 path

    # fc2 + ReLU
    h2 = jnp.dot(h1, w2_ref[...], preferred_element_type=jnp.float32)   # (TB, 32) f32
    h2 = jnp.maximum(h2 + b2_ref[...], 0.0)
    h2 = h2.astype(w3_ref.dtype)

    # fc3 + Sigmoid
    z = jnp.dot(h2, w3_ref[...], preferred_element_type=jnp.float32)    # (TB, 6) f32
    z = z + b3_ref[...]
    denom = 1.0 + jnp.exp(-z)
    if approx_sigmoid:
        o_ref[...] = pl.reciprocal(denom, approx=True)                   # EUP divide
    else:
        o_ref[...] = 1.0 / denom                                         # exact


def mario_nn_forward(x, params, *, tile_b=2048, use_bf16=False):
    """x: (B, INPUT_SIZE) f32.  params: PyTorch-convention weights (out,in) / biases (out,)."""
    B = x.shape[0]
    compute_dtype = jnp.bfloat16 if use_bf16 else jnp.float32

    # Glue (plain JAX): transpose weights to (in, out), reshape biases to (1, out).
    w1 = params["fc1_w"].T.astype(compute_dtype)                 # (70, 64)
    w2 = params["fc2_w"].T.astype(compute_dtype)                 # (64, 32)
    w3 = params["fc3_w"].T.astype(compute_dtype)                 # (32, 6)
    b1 = params["fc1_b"].reshape(1, HIDDEN_1).astype(jnp.float32)
    b2 = params["fc2_b"].reshape(1, HIDDEN_2).astype(jnp.float32)
    b3 = params["fc3_b"].reshape(1, OUTPUT_SIZE).astype(jnp.float32)

    # Batch tiling: TB is a multiple of 8; pad B up to a whole number of tiles.
    tb = min(int(tile_b), _round_up(B, 8))
    tb = _round_up(tb, 8)
    b_pad = _round_up(B, tb)
    x_p = x if b_pad == B else jnp.pad(x, ((0, b_pad - B), (0, 0)))
    x_p = x_p.astype(compute_dtype)

    grid = (b_pad // tb,)

    def resident(arr):  # whole array, same block every grid step -> stays in VMEM
        return pl.BlockSpec(arr.shape, lambda i: (0, 0))

    out = pl.pallas_call(
        functools.partial(mario_mlp_kernel, approx_sigmoid=use_bf16),
        out_shape=jax.ShapeDtypeStruct((b_pad, OUTPUT_SIZE), jnp.float32),
        grid=grid,
        in_specs=[
            pl.BlockSpec((tb, INPUT_SIZE), lambda i: (i, 0)),   # streamed batch tile
            resident(w1), resident(b1),
            resident(w2), resident(b2),
            resident(w3), resident(b3),
        ],
        out_specs=pl.BlockSpec((tb, OUTPUT_SIZE), lambda i: (i, 0)),
        compiler_params=pltpu.CompilerParams(
            dimension_semantics=("parallel",)),                 # megacore on v7x
    )(x_p, w1, b1, w2, b2, w3, b3)

    return out[:B]


def make_params(key):
    """Deterministic synthetic parameters with PyTorch nn.Linear shapes: weight (out, in)."""
    ks = jax.random.split(key, 6)
    return {
        "fc1_w": jax.random.normal(ks[0], (HIDDEN_1, INPUT_SIZE), jnp.float32) * 0.1,
        "fc1_b": jax.random.normal(ks[1], (HIDDEN_1,), jnp.float32) * 0.1,
        "fc2_w": jax.random.normal(ks[2], (HIDDEN_2, HIDDEN_1), jnp.float32) * 0.1,
        "fc2_b": jax.random.normal(ks[3], (HIDDEN_2,), jnp.float32) * 0.1,
        "fc3_w": jax.random.normal(ks[4], (OUTPUT_SIZE, HIDDEN_2), jnp.float32) * 0.1,
        "fc3_b": jax.random.normal(ks[5], (OUTPUT_SIZE,), jnp.float32) * 0.1,
    }


def reference_forward(x, params):
    """Pure-JAX reference mirroring the PyTorch forward (x @ W.T + b)."""
    h1 = jnp.maximum(x @ params["fc1_w"].T + params["fc1_b"], 0.0)
    h2 = jnp.maximum(h1 @ params["fc2_w"].T + params["fc2_b"], 0.0)
    z = h2 @ params["fc3_w"].T + params["fc3_b"]
    return jax.nn.sigmoid(z)


if __name__ == "__main__":
    key = jax.random.PRNGKey(0)
    kx, kx2, kp = jax.random.split(key, 3)
    params = make_params(kp)

    # 1) Small batch, f32 path (single tile, exercises padding B=8 -> tile of 8).
    x_small = jax.random.normal(kx, (8, INPUT_SIZE), jnp.float32)
    out_small = jax.block_until_ready(mario_nn_forward(x_small, params))
    ref_small = reference_forward(x_small, params)
    assert out_small.shape == (8, OUTPUT_SIZE)
    assert jnp.allclose(out_small, ref_small, atol=1e-5, rtol=1e-5)

    # 2) Multi-tile grid with ragged batch (B=200, TB=64 -> grid of 4, padded rows dropped), f32 path.
    x_med = jax.random.normal(kx2, (200, INPUT_SIZE), jnp.float32)
    out_med = jax.block_until_ready(mario_nn_forward(x_med, params, tile_b=64))
    ref_med = reference_forward(x_med, params)
    assert out_med.shape == (200, OUTPUT_SIZE)
    assert jnp.allclose(out_med, ref_med, atol=1e-5, rtol=1e-5)

    # 3) bf16 MXU-input path (f32 accumulation + f32 elementwise), looser tolerance.
    out_bf16 = jax.block_until_ready(
        mario_nn_forward(x_med, params, tile_b=64, use_bf16=True))
    assert out_bf16.shape == (200, OUTPUT_SIZE)
    assert jnp.allclose(out_bf16, ref_med, atol=3e-2)

    print("KERNEL_OK")
</pallas_src>

<mosaic_0001>
module attributes {stable_mosaic.version = 11 : i64} {
  func.func @mario_mlp_kernel(%arg0: i32, %arg1: memref<8x70xf32, #tpu.memory_space<vmem>>, %arg2: memref<70x64xf32, #tpu.memory_space<vmem>>, %arg3: memref<1x64xf32, #tpu.memory_space<vmem>>, %arg4: memref<64x32xf32, #tpu.memory_space<vmem>>, %arg5: memref<1x32xf32, #tpu.memory_space<vmem>>, %arg6: memref<32x6xf32, #tpu.memory_space<vmem>>, %arg7: memref<1x6xf32, #tpu.memory_space<vmem>>, %arg8: memref<8x6xf32, #tpu.memory_space<vmem>>) attributes {dimension_semantics = [#tpu.dimension_semantics<parallel>], iteration_bounds = array<i64: 1>, scalar_prefetch = 0 : i64, scratch_operands = 0 : i64, tpu.core_type = #tpu.core_type<tc>, window_params = [{transform_indices = @transform_0, window_bounds = array<i64: 8, 70>}, {pipeline_mode = #tpu.pipeline_mode<synchronous>, transform_indices = @transform_1, window_bounds = array<i64: 70, 64>}, {pipeline_mode = #tpu.pipeline_mode<synchronous>, transform_indices = @transform_2, window_bounds = array<i64: 1, 64>}, {pipeline_mode = #tpu.pipeline_mode<synchronous>, transform_indices = @transform_3, window_bounds = array<i64: 64, 32>}, {pipeline_mode = #tpu.pipeline_mode<synchronous>, transform_indices = @transform_4, window_bounds = array<i64: 1, 32>}, {pipeline_mode = #tpu.pipeline_mode<synchronous>, transform_indices = @transform_5, window_bounds = array<i64: 32, 6>}, {pipeline_mode = #tpu.pipeline_mode<synchronous>, transform_indices = @transform_6, window_bounds = array<i64: 1, 6>}, {transform_indices = @transform_7, window_bounds = array<i64: 8, 6>}]} {
    %c0 = arith.constant 0 : index
    %c0_0 = arith.constant 0 : index
    %0 = vector.load %arg1[%c0, %c0_0] : memref<8x70xf32, #tpu.memory_space<vmem>>, vector<8x70xf32>
    %c0_1 = arith.constant 0 : index
    %c0_2 = arith.constant 0 : index
    %1 = vector.load %arg2[%c0_1, %c0_2] : memref<70x64xf32, #tpu.memory_space<vmem>>, vector<70x64xf32>
    %cst = arith.constant dense<0.000000e+00> : vector<8x64xf32>
    %2 = tpu.matmul %0, %1, %cst {dimension_numbers = #tpu.dot_dimension_numbers<[1], [0], [0], [1], [0, 0, 1, 1], [], []>} : vector<8x70xf32>, vector<70x64xf32>, vector<8x64xf32> -> vector<8x64xf32>
    %c0_3 = arith.constant 0 : index
    %c0_4 = arith.constant 0 : index
    %3 = vector.load %arg3[%c0_3, %c0_4] : memref<1x64xf32, #tpu.memory_space<vmem>>, vector<1x64xf32>
    %4 = vector.broadcast %3 : vector<1x64xf32> to vector<8x64xf32>
    %5 = arith.addf %2, %4 : vector<8x64xf32>
    %cst_5 = arith.constant 0.000000e+00 : f32
    %6 = vector.broadcast %cst_5 : f32 to vector<8x64xf32>
    %7 = arith.maximumf %5, %6 : vector<8x64xf32>
    %c0_6 = arith.constant 0 : index
    %c0_7 = arith.constant 0 : index
    %8 = vector.load %arg4[%c0_6, %c0_7] : memref<64x32xf32, #tpu.memory_space<vmem>>, vector<64x32xf32>
    %cst_8 = arith.constant dense<0.000000e+00> : vector<8x32xf32>
    %9 = tpu.matmul %7, %8, %cst_8 {dimension_numbers = #tpu.dot_dimension_numbers<[1], [0], [0], [1], [0, 0, 1, 1], [], []>} : vector<8x64xf32>, vector<64x32xf32>, vector<8x32xf32> -> vector<8x32xf32>
    %c0_9 = arith.constant 0 : index
    %c0_10 = arith.constant 0 : index
    %10 = vector.load %arg5[%c0_9, %c0_10] : memref<1x32xf32, #tpu.memory_space<vmem>>, vector<1x32xf32>
    %11 = vector.broadcast %10 : vector<1x32xf32> to vector<8x32xf32>
    %12 = arith.addf %9, %11 : vector<8x32xf32>
    %cst_11 = arith.constant 0.000000e+00 : f32
    %13 = vector.broadcast %cst_11 : f32 to vector<8x32xf32>
    %14 = arith.maximumf %12, %13 : vector<8x32xf32>
    %c0_12 = arith.constant 0 : index
    %c0_13 = arith.constant 0 : index
    %15 = vector.load %arg6[%c0_12, %c0_13] : memref<32x6xf32, #tpu.memory_space<vmem>>, vector<32x6xf32>
    %cst_14 = arith.constant dense<0.000000e+00> : vector<8x6xf32>
    %16 = tpu.matmul %14, %15, %cst_14 {dimension_numbers = #tpu.dot_dimension_numbers<[1], [0], [0], [1], [0, 0, 1, 1], [], []>} : vector<8x32xf32>, vector<32x6xf32>, vector<8x6xf32> -> vector<8x6xf32>
    %c0_15 = arith.constant 0 : index
    %c0_16 = arith.constant 0 : index
    %17 = vector.load %arg7[%c0_15, %c0_16] : memref<1x6xf32, #tpu.memory_space<vmem>>, vector<1x6xf32>
    %18 = vector.broadcast %17 : vector<1x6xf32> to vector<8x6xf32>
    %19 = arith.addf %16, %18 : vector<8x6xf32>
    %cst_17 = arith.constant 0.000000e+00 : f32
    %20 = vector.broadcast %cst_17 : f32 to vector<8x6xf32>
    %21 = arith.subf %20, %19 : vector<8x6xf32>
    %22 = math.exp %21 : vector<8x6xf32>
    %cst_18 = arith.constant 1.000000e+00 : f32
    %23 = vector.broadcast %cst_18 : f32 to vector<8x6xf32>
    %24 = arith.addf %23, %22 : vector<8x6xf32>
    %cst_19 = arith.constant 1.000000e+00 : f32
    %25 = vector.broadcast %cst_19 : f32 to vector<8x6xf32>
    %26 = arith.divf %25, %24 : vector<8x6xf32>
    %c0_20 = arith.constant 0 : index
    %c0_21 = arith.constant 0 : index
    %27 = vector.load %arg8[%c0_20, %c0_21] : memref<8x6xf32, #tpu.memory_space<vmem>>, vector<8x6xf32>
    tpu.vector_store %arg8[%c0_20, %c0_21], %26 {strides = array<i32>} : memref<8x6xf32, #tpu.memory_space<vmem>>, vector<8x6xf32>,
    return
  }
  func.func @transform_0(%arg0: i32) -> (i32, i32) {
    %c0_i32 = arith.constant 0 : i32
    %c0_i32_0 = arith.constant 0 : i32
    return %arg0, %c0_i32 : i32, i32
  }
  func.func @transform_1(%arg0: i32) -> (i32, i32) {
    %c0_i32 = arith.constant 0 : i32
    %c0_i32_0 = arith.constant 0 : i32
    %c0_i32_1 = arith.constant 0 : i32
    return %c0_i32, %c0_i32_0 : i32, i32
  }
  func.func @transform_2(%arg0: i32) -> (i32, i32) {
    %c0_i32 = arith.constant 0 : i32
    %c0_i32_0 = arith.constant 0 : i32
    %c0_i32_1 = arith.constant 0 : i32
    return %c0_i32, %c0_i32_0 : i32, i32
  }
  func.func @transform_3(%arg0: i32) -> (i32, i32) {
    %c0_i32 = arith.constant 0 : i32
    %c0_i32_0 = arith.constant 0 : i32
    %c0_i32_1 = arith.constant 0 : i32
    return %c0_i32, %c0_i32_0 : i32, i32
  }
  func.func @transform_4(%arg0: i32) -> (i32, i32) {
    %c0_i32 = arith.constant 0 : i32
    %c0_i32_0 = arith.constant 0 : i32
    %c0_i32_1 = arith.constant 0 : i32
    return %c0_i32, %c0_i32_0 : i32, i32
  }
  func.func @transform_5(%arg0: i32) -> (i32, i32) {
    %c0_i32 = arith.constant 0 : i32
    %c0_i32_0 = arith.constant 0 : i32
    %c0_i32_1 = arith.constant 0 : i32
    return %c0_i32, %c0_i32_0 : i32, i32
  }
  func.func @transform_6(%arg0: i32) -> (i32, i32) {
    %c0_i32 = arith.constant 0 : i32
    %c0_i32_0 = arith.constant 0 : i32
    %c0_i32_1 = arith.constant 0 : i32
    return %c0_i32, %c0_i32_0 : i32, i32
  }
  func.func @transform_7(%arg0: i32) -> (i32, i32) {
    %c0_i32 = arith.constant 0 : i32
    %c0_i32_0 = arith.constant 0 : i32
    return %arg0, %c0_i32 : i32, i32
  }
}

</mosaic_0001>

<bundles_post_ra>
// kernel: tpu_custom_call.1
= control target key start
LH: loop header
LB: loop body
LE: loop exit
PB: predicated region body
PF: predicated region fallthrough
CT: control target
= control target key end

     0   :  { %vm45_vm0 = vcmask 1045504   ;;  %s333_s0 = inlined_call_operand.vmem [shape: f32[8,70], index: 0, kind: input, shape index: {}]   ;;  %s334_s1 = inlined_call_operand.vmem [shape: f32[70,64], index: 1, kind: input, shape index: {}]   ;;  %s335_s2 = inlined_call_operand.vmem [shape: f32[1,64], index: 2, kind: input, shape index: {}]   ;;  %s336_s3 = inlined_call_operand.vmem [shape: f32[64,32], index: 3, kind: input, shape index: {}]   ;;  %s337_s4 = inlined_call_operand.vmem [shape: f32[1,32], index: 4, kind: input, shape index: {}]   ;;  %s338_s5 = inlined_call_operand.vmem [shape: f32[32,6], index: 5, kind: input, shape index: {}]   ;;  %s339_s6 = inlined_call_operand.vmem [shape: f32[1,6], index: 6, kind: input, shape index: {}]   ;;  %s340_s7 = inlined_call_operand.hbm [shape: f32[8,6], index: 7, kind: output, shape index: {}]  }
   0x1   :  { %v36_v0 = vld [vmem:[%s334_s1 + $0x40] sm:$0x3f]  ;;  %v35_v1 = vld [vmem:[%s334_s1 + $0x38] sm:$0xff]  ;;  %v34_v2 = vld [vmem:[%s334_s1 + $0x30] sm:$0xff] }
   0x2   :  { %176 = vmatpush.msk.msra.mxu0 %vm45_vm0, %v36_v0  ;;  %v77_v3 = vld [vmem:[%s336_s3 + $0x38] sm:$0xff]  ;;  %v76_v4 = vld [vmem:[%s336_s3 + $0x30] sm:$0xff]  ;;  %v33_v5 = vld [vmem:[%s334_s1 + $0x28] sm:$0xff] }
   0x3   :  { %94 = vmatpush.msra.mxu1 %v77_v3  ;;  %v75_v6 = vld [vmem:[%s336_s3 + $0x28] sm:$0xff]  ;;  %v32_v7 = vld [vmem:[%s334_s1 + $0x20] sm:$0xff] }
   0x4   :  { %57 = vmatpush.msra.mxu0 %v35_v1 }
   0x5   :  { %95 = vmatpush.msra.mxu1 %v76_v4 }
   0x6   :  { %58 = vmatpush.msra.mxu0 %v34_v2 }
   0x7   :  { %12 = vsyncpa [#allocation3], 0  ;;  %v74_v8 = vld [vmem:[%s336_s3 + $0x20] sm:$0xff]  ;;  %v31_v9 = vld [vmem:[%s334_s1 + $0x18] sm:$0xff]  ;;  %96 = vmatpush.msra.mxu1 %v75_v6  ;;  %vm41_vm1 = vcmask 572416   ;;  %vm82_vm2 = vcmask 523264  }
   0x8   :  { %59 = vmatpush.msra.mxu0 %v33_v5  ;;  %v73_v10 = vld [vmem:[%s336_s3 + $0x18] sm:$0xff]  ;;  %v30_v11 = vld [vmem:[%s334_s1 + $0x10] sm:$0xff]  ;;  %v29_v12 = vld [vmem:[%s334_s1 + $0x8] sm:$0xff]  ;;  %vm115_vm3 = vcmask 261120   ;;  %vm158_vm7 = vcmask 48128  }
   0x9   :  { %97 = vmatpush.msra.mxu1 %v74_v8  ;;  %v28_v13 = vld [vmem:[%s334_s1] sm:$0xff]  ;;  %v72_v15 = vld [vmem:[%s336_s3 + $0x10] sm:$0xff]  ;;  %v71_v16 = vld [vmem:[%s336_s3 + $0x8] sm:$0xff] }
   0xa   :  { %60 = vmatpush.msra.mxu0 %v32_v7  ;;  %v27_v14 = vld [vmem:[%s333_s0] sm:$0xff]  ;;  %v110_v18 = vld [vmem:[%s338_s5 + $0x18] sm:$0xff]  ;;  %v109_v23 = vld [vmem:[%s338_s5 + $0x10] sm:$0xff] }
   0xb   :  { %98 = vmatpush.msra.mxu1 %v73_v10  ;;  %v70_v17 = vld [vmem:[%s336_s3] sm:$0xff]  ;;  %131 = vmatpush.msra.mxu2 %v110_v18  ;;  %v108_v24 = vld [vmem:[%s338_s5 + $0x8] sm:$0xff] }
   0xc   :  { %61 = vmatpush.msra.mxu0 %v31_v9  ;;  %v181_v19 = vld [vmem:[%s335_s2] ss:$0 sm:$0xff] }
   0xd   :  { %99 = vmatpush.msra.mxu1 %v72_v15  ;;  %132 = vmatpush.msra.mxu2 %v109_v23  ;;  %v107_v25 = vld [vmem:[%s338_s5] sm:$0xff] }
   0xe   :  { %62 = vmatpush.msra.mxu0 %v30_v11  ;;  %v182_v26 = vld [vmem:[%s337_s4] ss:$0 sm:$0xff]  ;;  %s214_s4 = smov [#allocation2]  }
   0xf   :  { %100 = vmatpush.msra.mxu1 %v71_v16  ;;  %133 = vmatpush.msra.mxu2 %v108_v24  ;;  %v183_v30 = vld [vmem:[%s339_s6] ss:$0 sm:$0xff]  ;;  %s165_s5 = sshll.u32 %s214_s4, 4  ;;  %s167_s6 = sshll.u32 %s340_s7, 4  ;;  %s166_s5 = int_to_ptr.vmem [resolvable:$true] %s165_s5  ;;  %s168_s6 = int_to_ptr.hbm [resolvable:$true] %s167_s6 }
  0x10   :  { %63 = vmatpush.msra.mxu0 %v29_v12 }
  0x11   :  { %101 = vmatpush.msra.mxu1 %v70_v17  ;;  %134 = vmatpush.msra.mxu2 %v107_v25 }
  0x12   :  { %64 = vmatpush.msra.mxu0 %v28_v13 }
  0x13   :  { %177 = vmatmul.msk.f32.vlgmr.msra.gmra.mxu0 %vm41_vm1, %v27_v14 }
  0x90   :  { %v66_v20 = vpop.f32.mrf.mxu0 }
  0x91   :  { %v67_v21 = vadd.f32 %v181_v19, %v66_v20 }
  0x93   :  { %v69_v22 = vmax.f32 %v67_v21, 0.0 }
  0x95   :  { %178 = vmatmul.msk.f32.vlgmr.msra.gmra.mxu1 %vm82_vm2, %v69_v22 }
 0x112   :  { %v103_v27 = vpop.f32.mrf.mxu1 }
 0x113   :  { %v104_v28 = vadd.f32 %v182_v26, %v103_v27 }
 0x115   :  { %v106_v29 = vmax.f32 %v104_v28, 0.0 }
 0x117   :  { %179 = vmatmul.msk.f32.vlgmr.msra.gmra.mxu2 %vm115_vm3, %v106_v29 }
 0x19a   :  { %v136_v31 = vpop.f32.mrf.mxu2 }
 0x19b   :  { %v137_v32 = vadd.f32 %v183_v30, %v136_v31 }
 0x19d   :  { %v139_v33 = vsub.f32 0.0, %v137_v32 }
 0x19f   :  { %v140_v34 = vmul.f32 1.442695, %v139_v33 }
 0x1a1   :  { %184 = vpow2.f32 %v140_v34 }
 0x1a7   :  { %v185_v35 = vpop.eup %184 }
 0x1a8   :  { %v142_v36 = vadd.f32 1.0, %v185_v35 }
 0x1aa   :  { %186 = vrcp.f32 %v142_v36  ;;  %v154_v40 = vand.u32 2147483648, %v142_v36  ;;  %v152_v42 = vand.u32 2147483647, %v142_v36  ;;  %vm148_vm5 = vweird.f32 %v142_v36 }
 0x1ac   :  { %v155_v44 = vor.u32 1.1754944e-38, %v154_v40  ;;  %vm153_vm8 = vcmp.eq.f32.partialorder %v152_v42, 8.507059e+37 }
 0x1b0   :  { %v187_v37 = vpop.eup %186 }
 0x1b1   :  { %v144_v38 = vmul.f32 %v187_v37, %v142_v36  ;;  %vm149_vm4 = vweird.f32 %v187_v37 }
 0x1b2   :  { %vm150_vm6 = vmor %vm148_vm5, %vm149_vm4 }
 0x1b3   :  { %v145_v39 = vsub.f32 1.0, %v144_v38 }
 0x1b5   :  { %v146_v41 = vmul.f32 %v187_v37, %v145_v39 }
 0x1b7   :  { %v147_v43 = vadd.f32 %v187_v37, %v146_v41 }
 0x1b9   :  { %v151_v45 = vsel %vm150_vm6, %v187_v37, %v147_v43 }
 0x1ba   :  { %v156_v46 = vsel %vm153_vm8, %v155_v44, %v151_v45 }
 0x1bb   :  { %159 = vst.msk [vmem:[#allocation2] sm:$0xff] %vm158_vm7, %v156_v46 }
 0x1bc   :  { %170 = dma.vmem_to_hbm [thread:$0]  %s166_s5, 128, %s168_s6, [#allocation3]  }
 0x1bd   :  { %212 = dma.done.wait [#allocation3], 128  }
 0x1be   :  { %213 = vsyncadd [#allocation3], 4294967168 }
 0x1bf   :  { %175 = vsyncpa [#allocation3], 1 }

</bundles_post_ra>
